<compile_context>
chip_gen: v5e
topology: v5e:2x2
jax: 0.10.0
libtpu: 0.0.40
codegen_flags: <defaults>
</compile_context>

<pallas_src>
import functools

import numpy as np
import jax
import jax.numpy as jnp
from jax.experimental import pallas as pl
from jax.experimental.pallas import tpu as pltpu


def _round_up(v, m):
    return (v + m - 1) // m * m


def _fourier_layer_kernel(x_ref, w_ref, o_ref, feats_ref, *,
                          g_chunk, num_chunks, in_dim):
    """One (B-tile i, O-tile j, harmonic-chunk k) grid step.

    x_ref     : (bb, I)               fp32 activations (same block for all j, k)
    w_ref     : (2*g_chunk*I, bo)     bf16 packed weights for harmonic chunk k
    o_ref     : (bb, bo)              fp32 output tile; VMEM-resident across k,
                                      used directly as the accumulator
    feats_ref : (nk, bb, 2*g_chunk*I) bf16 persistent feature cache; built once
                                      per (B tile, chunk) at j == 0, reused j>0
    """
    j = pl.program_id(1)
    k = pl.program_id(2)

    @pl.when(k == 0)
    def _init():
        o_ref[...] = jnp.zeros_like(o_ref)

    # Features depend only on (i, k): build them on the first O tile only and
    # reuse the cached bf16 slab for every j > 0 (saves EUP transcendentals,
    # VPU recurrence and casts (Op/bo - 1) times per B tile).
    @pl.when(j == 0)
    def _build_feats():
        x = x_ref[...].astype(jnp.float32)
        # Base angle on the EUP; higher harmonics via the angle-addition
        # recurrence on the VPU: c_{n+1} = c_n*c1 - s_n*s1, s_{n+1} = s_n*c1 + c_n*s1.
        c1 = jnp.cos(x)
        s1 = jnp.sin(x)
        if num_chunks == 1:
            c, s = c1, s1
        else:
            # Re-seed exact cos/sin at the start of every chunk so recurrence
            # drift is bounded by g_chunk, not by the full gridsize.
            first = (k * g_chunk + 1).astype(jnp.float32)
            c = jnp.cos(first * x)
            s = jnp.sin(first * x)
        # Store each harmonic as produced: bounds live values to {c, s, c1, s1}
        # and avoids a concatenate relayout copy.
        for h in range(g_chunk):
            feats_ref[k, :, pl.ds(h * in_dim, in_dim)] = c.astype(feats_ref.dtype)
            feats_ref[k, :, pl.ds((g_chunk + h) * in_dim, in_dim)] = s.astype(feats_ref.dtype)
            if h + 1 < g_chunk:
                c, s = c * c1 - s * s1, s * c1 + c * s1

    # One large-K bf16 MXU matmul per chunk, fp32 accumulation directly in the
    # resident output tile.
    o_ref[...] += jnp.dot(feats_ref[k], w_ref[...],
                          preferred_element_type=jnp.float32)


def pack_fourier_layer(coeffs, gridsize, *, block_o=256, g_chunk=None,
                       max_g_chunk=32, weight_dtype=jnp.bfloat16,
                       weight_block_budget_bytes=6 * 1024 * 1024):
    """One-time repack of (O, I, 2*G) coefficients into the kernel layout.

    Returns (w_packed, meta): w_packed is (num_chunks * 2*g_chunk*I, O_pad),
    rows per chunk ordered [cos harmonic slabs | sin harmonic slabs] (each slab
    I rows), O padded to a multiple of the O tile for lane-dense stores, bf16.

    block_o=256 fills the 256-wide MXU N dimension on v6e/v7x (v5e's 128-wide
    MXU simply runs it as two passes).  The ~6 MiB weight-block budget keeps
    double-buffered weights v7x-safe (64 MiB VMEM/TC); on v5e/v6e (128 MiB)
    it can be raised for even fewer grid steps.
    """
    O, I, two_g = coeffs.shape
    G = gridsize
    assert two_g == 2 * G

    bo = min(_round_up(block_o, 128), _round_up(O, 128))
    Op = _round_up(O, bo)

    if g_chunk is None:
        per_harmonic = 2 * I * bo * np.dtype(weight_dtype).itemsize
        g_chunk = max(1, weight_block_budget_bytes // max(1, per_harmonic))
    # Cap chunk length so angle-addition recurrence drift stays small.
    g_chunk = max(1, min(g_chunk, G, max_g_chunk))
    # bf16 native sublane tile is 16: keep the K block 16-aligned unless the
    # chunk already covers every harmonic (then it equals the full K dim).
    while g_chunk < G and (2 * g_chunk * I) % 16 != 0:
        g_chunk += 1
    num_chunks = -(-G // g_chunk)
    Gp = num_chunks * g_chunk

    wc = jnp.transpose(coeffs[:, :, :G], (2, 1, 0))   # (G, I, O) cosine coeffs
    ws = jnp.transpose(coeffs[:, :, G:], (2, 1, 0))   # (G, I, O) sine coeffs
    if Gp != G:                                       # zero-pad harmonics
        pad = ((0, Gp - G), (0, 0), (0, 0))
        wc = jnp.pad(wc, pad)
        ws = jnp.pad(ws, pad)
    if Op != O:                                       # lane-dense output columns
        pad = ((0, 0), (0, 0), (0, Op - O))
        wc = jnp.pad(wc, pad)
        ws = jnp.pad(ws, pad)

    wc = wc.reshape(num_chunks, g_chunk, I, Op)
    ws = ws.reshape(num_chunks, g_chunk, I, Op)
    w = jnp.concatenate([wc, ws], axis=1)             # (nk, 2*gc, I, Op)
    w = w.reshape(num_chunks * 2 * g_chunk * I, Op).astype(weight_dtype)

    meta = dict(in_dim=I, out_dim=O, out_dim_padded=Op, gridsize=G,
                g_chunk=g_chunk, num_chunks=num_chunks, block_o=bo)
    return w, meta


def fourier_layer(x, w_packed, meta, *, block_b=512,
                  vmem_limit_bytes=48 * 1024 * 1024):
    """One FourierLayer: x (B, I) fp32 -> (B, O) fp32."""
    B, I = x.shape
    assert I == meta["in_dim"], (I, meta["in_dim"])
    gc = meta["g_chunk"]
    nk = meta["num_chunks"]
    Op = meta["out_dim_padded"]
    bo = meta["block_o"]
    kblk = 2 * gc * I

    # Large B tiles amortize weight streaming (weight HBM traffic ~ B/bb);
    # shrink only if double buffers + the feature cache would blow the
    # (v7x-safe, 48 MiB) VMEM budget.
    bb = _round_up(min(block_b, _round_up(B, 8)), 8)

    def est_vmem(bb_):
        return (2 * bb_ * I * 4            # x (double-buffered, fp32)
                + 2 * kblk * bo * 2        # weights (double-buffered, bf16)
                + 2 * bb_ * bo * 4         # output tiles (double-buffered, fp32)
                + nk * bb_ * kblk * 2)     # persistent bf16 feature cache

    while bb > 8 and est_vmem(bb) > (3 * vmem_limit_bytes) // 4:
        bb = max(8, _round_up(bb // 2, 8))

    Bp = _round_up(B, bb)
    if Bp != B:
        x = jnp.pad(x, ((0, Bp - B), (0, 0)))
    x = x.astype(jnp.float32)

    grid = (Bp // bb, Op // bo, nk)

    out = pl.pallas_call(
        functools.partial(_fourier_layer_kernel,
                          g_chunk=gc, num_chunks=nk, in_dim=I),
        out_shape=jax.ShapeDtypeStruct((Bp, Op), jnp.float32),
        grid=grid,
        in_specs=[
            pl.BlockSpec((bb, I), lambda i, j, k: (i, 0)),     # activations
            pl.BlockSpec((kblk, bo), lambda i, j, k: (k, j)),  # packed weights
        ],
        out_specs=pl.BlockSpec((bb, bo), lambda i, j, k: (i, j)),
        scratch_shapes=[pltpu.VMEM((nk, bb, kblk), jnp.bfloat16)],
        # Feature cache is built at j == 0 and reused for j > 0, so the O axis
        # must stay on one core: only the B axis is megacore-parallel.
        compiler_params=pltpu.CompilerParams(
            dimension_semantics=("parallel", "arbitrary", "arbitrary"),
            vmem_limit_bytes=vmem_limit_bytes),
    )(x, w_packed)

    # Strip batch / lane padding (padded weight columns are zero anyway).
    return out[:B, :meta["out_dim"]]


def init_fourier_kan_params(key, layers, degree):
    """th.randn(O, I, 2G) / (sqrt(I)*sqrt(G)) — raw (reference) layout."""
    params = []
    for i in range(len(layers) - 1):
        key, sub = jax.random.split(key)
        I, O = layers[i], layers[i + 1]
        coeffs = jax.random.normal(sub, (O, I, 2 * degree), jnp.float32)
        coeffs = coeffs / (jnp.sqrt(float(I)) * jnp.sqrt(float(degree)))
        params.append(coeffs)
    return params


def pack_fourier_kan_params(raw_params, degree, **kwargs):
    """Hoisted one-time repack of every layer to kernel layout (bf16)."""
    return [pack_fourier_layer(c, degree, **kwargs) for c in raw_params]


def fourier_kan_forward(x, packed_params):
    for w_packed, meta in packed_params:
        x = fourier_layer(x, w_packed, meta)
    return x


def _reference_forward(x, raw_params, degree):
    """Pure-JAX fp32 reference of the PyTorch semantics (for verification)."""
    for coeffs in raw_params:
        k = jnp.arange(1, degree + 1, dtype=jnp.float32).reshape(1, 1, degree)
        xr = x[:, :, None]
        feats = jnp.concatenate([jnp.cos(k * xr), jnp.sin(k * xr)], axis=-1)
        x = jnp.einsum("bid,oid->bo", feats, coeffs)
    return x


if __name__ == "__main__":
    key = jax.random.PRNGKey(0)
    layers = (8, 16, 4)
    degree = 5
    batch = 2

    key, kx, kp = jax.random.split(key, 3)
    x = jax.random.normal(kx, (batch, layers[0]), jnp.float32)
    raw_params = init_fourier_kan_params(kp, layers, degree)

    # One-time weight repack (outside the forward path).
    packed_params = pack_fourier_kan_params(raw_params, degree)

    out = fourier_kan_forward(x, packed_params)
    out = jax.block_until_ready(out)

    ref = _reference_forward(x, raw_params, degree)
    assert out.shape == (batch, layers[-1]), out.shape
    # bf16 matmul operands with fp32 accumulation -> relaxed tolerance vs fp32 ref.
    assert jnp.allclose(out, ref, atol=3e-2, rtol=3e-2), (out, ref)

    print("KERNEL_OK")
</pallas_src>

<mosaic_0001>
module attributes {stable_mosaic.version = 11 : i64} {
  func.func @_fourier_layer_kernel(%arg0: i32, %arg1: i32, %arg2: i32, %arg3: memref<8x8xf32, #tpu.memory_space<vmem>>, %arg4: memref<80x128xbf16, #tpu.memory_space<vmem>>, %arg5: memref<8x128xf32, #tpu.memory_space<vmem>>, %arg6: memref<1x8x80xbf16, #tpu.memory_space<vmem>>) attributes {dimension_semantics = [#tpu.dimension_semantics<parallel>, #tpu.dimension_semantics<arbitrary>, #tpu.dimension_semantics<arbitrary>], iteration_bounds = array<i64: 1, 1, 1>, scalar_prefetch = 0 : i64, scratch_operands = 1 : i64, tpu.core_type = #tpu.core_type<tc>, window_params = [{transform_indices = @transform_0, window_bounds = array<i64: 8, 8>}, {transform_indices = @transform_1, window_bounds = array<i64: 80, 128>}, {transform_indices = @transform_2, window_bounds = array<i64: 8, 128>}]} {
    %c0_i32 = arith.constant 0 : i32
    %0 = arith.cmpi eq, %arg2, %c0_i32 : i32
    %1 = arith.extui %0 : i1 to i32
    %c0_i32_0 = arith.constant 0 : i32
    %2 = arith.cmpi ne, %1, %c0_i32_0 : i32
    scf.if %2 {
      %cst_10 = arith.constant 0.000000e+00 : f32
      %14 = vector.broadcast %cst_10 : f32 to vector<8x128xf32>
      %c0_11 = arith.constant 0 : index
      %c0_12 = arith.constant 0 : index
      %15 = vector.load %arg5[%c0_11, %c0_12] : memref<8x128xf32, #tpu.memory_space<vmem>>, vector<8x128xf32>
      tpu.vector_store %arg5[%c0_11, %c0_12], %14 {strides = array<i32>} : memref<8x128xf32, #tpu.memory_space<vmem>>, vector<8x128xf32>,
    } else {
    }
    %c0_i32_1 = arith.constant 0 : i32
    %3 = arith.cmpi eq, %arg1, %c0_i32_1 : i32
    %4 = arith.extui %3 : i1 to i32
    %c0_i32_2 = arith.constant 0 : i32
    %5 = arith.cmpi ne, %4, %c0_i32_2 : i32
    scf.if %5 {
      %c0_10 = arith.constant 0 : index
      %c0_11 = arith.constant 0 : index
      %14 = vector.load %arg3[%c0_10, %c0_11] : memref<8x8xf32, #tpu.memory_space<vmem>>, vector<8x8xf32>
      %15 = math.cos %14 : vector<8x8xf32>
      %16 = math.sin %14 : vector<8x8xf32>
      %17 = arith.truncf %15 : vector<8x8xf32> to vector<8x8xbf16>
      %18 = arith.index_cast %arg2 : i32 to index
      %c0_12 = arith.constant 0 : index
      %c0_13 = arith.constant 0 : index
      %19 = vector.load %arg6[%18, %c0_12, %c0_13] : memref<1x8x80xbf16, #tpu.memory_space<vmem>>, vector<1x8x8xbf16>
      %20 = vector.shape_cast %19 : vector<1x8x8xbf16> to vector<8x8xbf16>
      %21 = vector.shape_cast %17 : vector<8x8xbf16> to vector<1x8x8xbf16>
      tpu.vector_store %arg6[%18, %c0_12, %c0_13], %21 {strides = array<i32>} : memref<1x8x80xbf16, #tpu.memory_space<vmem>>, vector<1x8x8xbf16>,
      %22 = arith.truncf %16 : vector<8x8xf32> to vector<8x8xbf16>
      %23 = arith.index_cast %arg2 : i32 to index
      %c0_14 = arith.constant 0 : index
      %c40 = arith.constant 40 : index
      %24 = vector.load %arg6[%23, %c0_14, %c40] : memref<1x8x80xbf16, #tpu.memory_space<vmem>>, vector<1x8x8xbf16>
      %25 = vector.shape_cast %24 : vector<1x8x8xbf16> to vector<8x8xbf16>
      %26 = vector.shape_cast %22 : vector<8x8xbf16> to vector<1x8x8xbf16>
      tpu.vector_store %arg6[%23, %c0_14, %c40], %26 {strides = array<i32>} : memref<1x8x80xbf16, #tpu.memory_space<vmem>>, vector<1x8x8xbf16>,
      %27 = arith.mulf %15, %15 : vector<8x8xf32>
      %28 = arith.mulf %16, %16 : vector<8x8xf32>
      %29 = arith.subf %27, %28 : vector<8x8xf32>
      %30 = arith.mulf %16, %15 : vector<8x8xf32>
      %31 = arith.mulf %15, %16 : vector<8x8xf32>
      %32 = arith.addf %30, %31 : vector<8x8xf32>
      %33 = arith.truncf %29 : vector<8x8xf32> to vector<8x8xbf16>
      %34 = arith.index_cast %arg2 : i32 to index
      %c0_15 = arith.constant 0 : index
      %c8 = arith.constant 8 : index
      %35 = vector.load %arg6[%34, %c0_15, %c8] : memref<1x8x80xbf16, #tpu.memory_space<vmem>>, vector<1x8x8xbf16>
      %36 = vector.shape_cast %35 : vector<1x8x8xbf16> to vector<8x8xbf16>
      %37 = vector.shape_cast %33 : vector<8x8xbf16> to vector<1x8x8xbf16>
      tpu.vector_store %arg6[%34, %c0_15, %c8], %37 {strides = array<i32>} : memref<1x8x80xbf16, #tpu.memory_space<vmem>>, vector<1x8x8xbf16>,
      %38 = arith.truncf %32 : vector<8x8xf32> to vector<8x8xbf16>
      %39 = arith.index_cast %arg2 : i32 to index
      %c0_16 = arith.constant 0 : index
      %c48 = arith.constant 48 : index
      %40 = vector.load %arg6[%39, %c0_16, %c48] : memref<1x8x80xbf16, #tpu.memory_space<vmem>>, vector<1x8x8xbf16>
      %41 = vector.shape_cast %40 : vector<1x8x8xbf16> to vector<8x8xbf16>
      %42 = vector.shape_cast %38 : vector<8x8xbf16> to vector<1x8x8xbf16>
      tpu.vector_store %arg6[%39, %c0_16, %c48], %42 {strides = array<i32>} : memref<1x8x80xbf16, #tpu.memory_space<vmem>>, vector<1x8x8xbf16>,
      %43 = arith.mulf %29, %15 : vector<8x8xf32>
      %44 = arith.mulf %32, %16 : vector<8x8xf32>
      %45 = arith.subf %43, %44 : vector<8x8xf32>
      %46 = arith.mulf %32, %15 : vector<8x8xf32>
      %47 = arith.mulf %29, %16 : vector<8x8xf32>
      %48 = arith.addf %46, %47 : vector<8x8xf32>
      %49 = arith.truncf %45 : vector<8x8xf32> to vector<8x8xbf16>
      %50 = arith.index_cast %arg2 : i32 to index
      %c0_17 = arith.constant 0 : index
      %c16 = arith.constant 16 : index
      %51 = vector.load %arg6[%50, %c0_17, %c16] : memref<1x8x80xbf16, #tpu.memory_space<vmem>>, vector<1x8x8xbf16>
      %52 = vector.shape_cast %51 : vector<1x8x8xbf16> to vector<8x8xbf16>
      %53 = vector.shape_cast %49 : vector<8x8xbf16> to vector<1x8x8xbf16>
      tpu.vector_store %arg6[%50, %c0_17, %c16], %53 {strides = array<i32>} : memref<1x8x80xbf16, #tpu.memory_space<vmem>>, vector<1x8x8xbf16>,
      %54 = arith.truncf %48 : vector<8x8xf32> to vector<8x8xbf16>
      %55 = arith.index_cast %arg2 : i32 to index
      %c0_18 = arith.constant 0 : index
      %c56 = arith.constant 56 : index
      %56 = vector.load %arg6[%55, %c0_18, %c56] : memref<1x8x80xbf16, #tpu.memory_space<vmem>>, vector<1x8x8xbf16>
      %57 = vector.shape_cast %56 : vector<1x8x8xbf16> to vector<8x8xbf16>
      %58 = vector.shape_cast %54 : vector<8x8xbf16> to vector<1x8x8xbf16>
      tpu.vector_store %arg6[%55, %c0_18, %c56], %58 {strides = array<i32>} : memref<1x8x80xbf16, #tpu.memory_space<vmem>>, vector<1x8x8xbf16>,
      %59 = arith.mulf %45, %15 : vector<8x8xf32>
      %60 = arith.mulf %48, %16 : vector<8x8xf32>
      %61 = arith.subf %59, %60 : vector<8x8xf32>
      %62 = arith.mulf %48, %15 : vector<8x8xf32>
      %63 = arith.mulf %45, %16 : vector<8x8xf32>
      %64 = arith.addf %62, %63 : vector<8x8xf32>
      %65 = arith.truncf %61 : vector<8x8xf32> to vector<8x8xbf16>
      %66 = arith.index_cast %arg2 : i32 to index
      %c0_19 = arith.constant 0 : index
      %c24 = arith.constant 24 : index
      %67 = vector.load %arg6[%66, %c0_19, %c24] : memref<1x8x80xbf16, #tpu.memory_space<vmem>>, vector<1x8x8xbf16>
      %68 = vector.shape_cast %67 : vector<1x8x8xbf16> to vector<8x8xbf16>
      %69 = vector.shape_cast %65 : vector<8x8xbf16> to vector<1x8x8xbf16>
      tpu.vector_store %arg6[%66, %c0_19, %c24], %69 {strides = array<i32>} : memref<1x8x80xbf16, #tpu.memory_space<vmem>>, vector<1x8x8xbf16>,
      %70 = arith.truncf %64 : vector<8x8xf32> to vector<8x8xbf16>
      %71 = arith.index_cast %arg2 : i32 to index
      %c0_20 = arith.constant 0 : index
      %c64 = arith.constant 64 : index
      %72 = vector.load %arg6[%71, %c0_20, %c64] : memref<1x8x80xbf16, #tpu.memory_space<vmem>>, vector<1x8x8xbf16>
      %73 = vector.shape_cast %72 : vector<1x8x8xbf16> to vector<8x8xbf16>
      %74 = vector.shape_cast %70 : vector<8x8xbf16> to vector<1x8x8xbf16>
      tpu.vector_store %arg6[%71, %c0_20, %c64], %74 {strides = array<i32>} : memref<1x8x80xbf16, #tpu.memory_space<vmem>>, vector<1x8x8xbf16>,
      %75 = arith.mulf %61, %15 : vector<8x8xf32>
      %76 = arith.mulf %64, %16 : vector<8x8xf32>
      %77 = arith.subf %75, %76 : vector<8x8xf32>
      %78 = arith.mulf %64, %15 : vector<8x8xf32>
      %79 = arith.mulf %61, %16 : vector<8x8xf32>
      %80 = arith.addf %78, %79 : vector<8x8xf32>
      %81 = arith.truncf %77 : vector<8x8xf32> to vector<8x8xbf16>
      %82 = arith.index_cast %arg2 : i32 to index
      %c0_21 = arith.constant 0 : index
      %c32 = arith.constant 32 : index
      %83 = vector.load %arg6[%82, %c0_21, %c32] : memref<1x8x80xbf16, #tpu.memory_space<vmem>>, vector<1x8x8xbf16>
      %84 = vector.shape_cast %83 : vector<1x8x8xbf16> to vector<8x8xbf16>
      %85 = vector.shape_cast %81 : vector<8x8xbf16> to vector<1x8x8xbf16>
      tpu.vector_store %arg6[%82, %c0_21, %c32], %85 {strides = array<i32>} : memref<1x8x80xbf16, #tpu.memory_space<vmem>>, vector<1x8x8xbf16>,
      %86 = arith.truncf %80 : vector<8x8xf32> to vector<8x8xbf16>
      %87 = arith.index_cast %arg2 : i32 to index
      %c0_22 = arith.constant 0 : index
      %c72 = arith.constant 72 : index
      %88 = vector.load %arg6[%87, %c0_22, %c72] : memref<1x8x80xbf16, #tpu.memory_space<vmem>>, vector<1x8x8xbf16>
      %89 = vector.shape_cast %88 : vector<1x8x8xbf16> to vector<8x8xbf16>
      %90 = vector.shape_cast %86 : vector<8x8xbf16> to vector<1x8x8xbf16>
      tpu.vector_store %arg6[%87, %c0_22, %c72], %90 {strides = array<i32>} : memref<1x8x80xbf16, #tpu.memory_space<vmem>>, vector<1x8x8xbf16>,
    } else {
    }
    %c0 = arith.constant 0 : index
    %c0_3 = arith.constant 0 : index
    %6 = vector.load %arg5[%c0, %c0_3] : memref<8x128xf32, #tpu.memory_space<vmem>>, vector<8x128xf32>
    %7 = arith.index_cast %arg2 : i32 to index
    %c0_4 = arith.constant 0 : index
    %c0_5 = arith.constant 0 : index
    %8 = vector.load %arg6[%7, %c0_4, %c0_5] : memref<1x8x80xbf16, #tpu.memory_space<vmem>>, vector<1x8x80xbf16>
    %9 = vector.shape_cast %8 : vector<1x8x80xbf16> to vector<8x80xbf16>
    %c0_6 = arith.constant 0 : index
    %c0_7 = arith.constant 0 : index
    %10 = vector.load %arg4[%c0_6, %c0_7] : memref<80x128xbf16, #tpu.memory_space<vmem>>, vector<80x128xbf16>
    %cst = arith.constant dense<0.000000e+00> : vector<8x128xf32>
    %11 = tpu.matmul %9, %10, %cst {dimension_numbers = #tpu.dot_dimension_numbers<[1], [0], [0], [1], [0, 0, 1, 1], [], []>} : vector<8x80xbf16>, vector<80x128xbf16>, vector<8x128xf32> -> vector<8x128xf32>
    %12 = arith.addf %6, %11 : vector<8x128xf32>
    %c0_8 = arith.constant 0 : index
    %c0_9 = arith.constant 0 : index
    %13 = vector.load %arg5[%c0_8, %c0_9] : memref<8x128xf32, #tpu.memory_space<vmem>>, vector<8x128xf32>
    tpu.vector_store %arg5[%c0_8, %c0_9], %12 {strides = array<i32>} : memref<8x128xf32, #tpu.memory_space<vmem>>, vector<8x128xf32>,
    return
  }
  func.func @transform_0(%arg0: i32, %arg1: i32, %arg2: i32) -> (i32, i32) {
    %c0_i32 = arith.constant 0 : i32
    %c0_i32_0 = arith.constant 0 : i32
    return %arg0, %c0_i32 : i32, i32
  }
  func.func @transform_1(%arg0: i32, %arg1: i32, %arg2: i32) -> (i32, i32) {
    %c0_i32 = arith.constant 0 : i32
    return %arg2, %arg1 : i32, i32
  }
  func.func @transform_2(%arg0: i32, %arg1: i32, %arg2: i32) -> (i32, i32) {
    %c0_i32 = arith.constant 0 : i32
    return %arg0, %arg1 : i32, i32
  }
}

</mosaic_0001>

<bundles_post_ra>
// kernel: tpu_custom_call.1
= control target key start
LH: loop header
LB: loop body
LE: loop exit
PB: predicated region body
PF: predicated region fallthrough
CT: control target
= control target key end

     0   :  { %7 = vsyncpa [#allocation4], 0  ;;  %s754_s0 = inlined_call_operand.hbm [shape: f32[8,8], index: 0, kind: input, shape index: {}]   ;;  %s755_s1 = inlined_call_operand.hbm [shape: bf16[80,128], index: 1, kind: input, shape index: {}]   ;;  %s756_s2 = inlined_call_operand.hbm [shape: f32[8,128], index: 2, kind: output, shape index: {}]  }
   0x1   :  { %8 = vsyncpa [#allocation7], 0 }
   0x2   :  { %9 = vsyncpa [#allocation5], 0  ;;  %s15_s11 = sshll.u32 %s754_s0, 4  ;;  %s661_s12 = smov [#allocation3]   ;;  %s16_s11 = int_to_ptr.hbm [resolvable:$true] %s15_s11 }
   0x3   :  { %s17_s13 = sshll.u32 %s661_s12, 4  ;;  %s25_s16 = sshll.u32 %s755_s1, 4  ;;  %s18_s13 = int_to_ptr.vmem [resolvable:$true] %s17_s13  ;;  %s26_s16 = int_to_ptr.hbm [resolvable:$true] %s25_s16 }
   0x4   :  { %20 = dma.hbm_to_vmem [thread:$0]  %s16_s11, 128, %s18_s13, [#allocation4]  }
   0x5   :  { %s662_s17 = smov [#allocation6]   ;;  %s663_s19 = smov 64  }
   0x6   :  { %s27_s18 = sshll.u32 %s662_s17, 4  ;;  %s664_s20 = smov 4   ;;  %s28_s18 = int_to_ptr.vmem [resolvable:$true] %s27_s18 }
   0x7   :  { %33 = dma.hbm_to_vmem [thread:$0]  %s26_s16, 640, %s28_s18, [#allocation7], %s663_s19, %s663_s19, %s664_s20  }
   0x8   :  { %655 = dma.done.wait [#allocation4], 128  }
   0x9   :  { %656 = vsyncadd [#allocation4], 4294967168 }
   0xa   :  { %657 = dma.done.wait [#allocation7], 640  }
   0xb   :  { %658 = vsyncadd [#allocation7], 4294966656  ;;  %v704_v0 = vld [vmem:[#allocation3] sm:$0xff]  ;;  %v665_v12 = vmov 683565275   ;;  %s672_s0 = smov 40  }
   0xc   :  { %v56_v1 = vand.u32 2139095040, %v704_v0  ;;  %v53_v3 = vand.u32 2147483647, %v704_v0  ;;  %v666_v14 = vmov 2475754826   ;;  %vm55_vm12 = vcmp.lt.s32.totalorder %v704_v0, 0 }
   0xd   :  { %v667_v16 = vmov 2131351028   ;;  %v668_v18 = vmov 2102212464   ;;  %v669_v20 = vmov 920167782  }
   0xe   :  { %v57_v2 = vshrl.u32 %v56_v1, 23  ;;  %v60_v6 = vand.u32 8388607, %v53_v3  ;;  %v670_v26 = vmov 1326507024   ;;  %v671_v1 = vmov 0  }
   0xf   :  { %vm54_vm13 = vcmp.le.f32.partialorder %v53_v3, 0.7853982  ;;  %s673_s1 = smov 48   ;;  %s674_s21 = smov 8  }
  0x10   :  { %v530_v4 = vadd.s32 4294967169, %v57_v2  ;;  %v61_v9 = vor.u32 8388608, %v60_v6  ;;  %s675_s22 = smov 56   ;;  %s676_s23 = smov 16  }
  0x11   :  { %s677_s24 = smov 24   ;;  %s678_s25 = smov 32  }
  0x12   :  { %v63_v5 = vadd.s32 1, %v530_v4  ;;  %v713_v28 = vshll.u32 %v61_v9, 8  ;;  %s679_s26 = smov 72   ;;  %s680_s27 = smov [#allocation8]  }
  0x13   :  { %s517_s28 = sshll.u32 %s680_s27, 4  ;;  %s519_s3 = sshll.u32 %s756_s2, 4  ;;  %s518_s28 = int_to_ptr.vmem [resolvable:$true] %s517_s28  ;;  %s520_s3 = int_to_ptr.hbm [resolvable:$true] %s519_s3 }
  0x14   :  { %vm64_vm0 = vcmp.gt.s32.totalorder %v63_v5, 0  ;;  %v102_v40 = vand.u32 65535, %v713_v28  ;;  %v103_v41 = vshrl.u32 %v713_v28, 16 }
  0x15   :  { %v65_v7 = vsel %vm64_vm0, %v63_v5, 0 }
  0x16   :  { %v67_v8 = vand.u32 31, %v65_v7  ;;  %v710_v10 = vshrl.u32 %v65_v7, 5 }
  0x18   :  { %v68_v11 = vsub.s32 32, %v67_v8  ;;  %v70_v13 = vshll.u32 %v665_v12, %v67_v8  ;;  %v73_v15 = vshll.u32 %v666_v14, %v67_v8  ;;  %v76_v17 = vshll.u32 %v667_v16, %v67_v8 }
  0x19   :  { %v79_v19 = vshll.u32 %v668_v18, %v67_v8  ;;  %v82_v21 = vshll.u32 %v669_v20, %v67_v8  ;;  %vm85_vm1 = vcmp.lt.s32.totalorder %v710_v10, 1  ;;  %vm88_vm2 = vcmp.lt.s32.totalorder %v710_v10, 4 }
  0x1a   :  { %v71_v22 = vshrl.u32 %v666_v14, %v68_v11  ;;  %v74_v23 = vshrl.u32 %v667_v16, %v68_v11  ;;  %v77_v24 = vshrl.u32 %v668_v18, %v68_v11  ;;  %v80_v25 = vshrl.u32 %v669_v20, %v68_v11 }
  0x1b   :  { %v83_v27 = vshrl.u32 %v670_v26, %v68_v11  ;;  %vm87_vm3 = vcmp.lt.s32.totalorder %v710_v10, 3  ;;  %vm86_vm4 = vcmp.lt.s32.totalorder %v710_v10, 2  ;;  %v69_v48 = vshrl.u32 %v665_v12, %v68_v11 }
  0x1c   :  { %v72_v29 = vor.u32 %v71_v22, %v70_v13  ;;  %v75_v30 = vor.u32 %v74_v23, %v73_v15  ;;  %v78_v31 = vor.u32 %v77_v24, %v76_v17  ;;  %v81_v32 = vor.u32 %v80_v25, %v79_v19 }
  0x1d   :  { %v84_v33 = vor.u32 %v83_v27, %v82_v21 }
  0x1e   :  { %v93_v34 = vsel %vm85_vm1, %v72_v29, %v75_v30  ;;  %v97_v35 = vsel %vm85_vm1, %v75_v30, %v78_v31  ;;  %v94_v36 = vsel %vm88_vm2, %v81_v32, 920167782  ;;  %v89_v61 = vsel %vm85_vm1, %v69_v48, %v72_v29 }
  0x1f   :  { %v98_v37 = vsel %vm88_vm2, %v84_v33, 1326507024  ;;  %v95_v38 = vsel %vm87_vm3, %v78_v31, %v94_v36  ;;  %v90_v63 = vsel %vm88_vm2, %v78_v31, 2102212464 }
  0x20   :  { %v99_v39 = vsel %vm87_vm3, %v81_v32, %v98_v37  ;;  %v96_v42 = vsel %vm86_vm4, %v93_v34, %v95_v38  ;;  %v91_v12 = vsel %vm87_vm3, %v75_v30, %v90_v63 }
  0x21   :  { %v100_v43 = vsel %vm86_vm4, %v97_v35, %v99_v39  ;;  %v126_v46 = vand.u32 65535, %v96_v42  ;;  %v127_v47 = vshrl.u32 %v96_v42, 16  ;;  %v92_v20 = vsel %vm86_vm4, %v89_v61, %v91_v12 }
  0x22   :  { %v104_v44 = vand.u32 65535, %v100_v43  ;;  %v105_v45 = vshrl.u32 %v100_v43, 16  ;;  %v146_v24 = vmul.u32 %v713_v28, %v92_v20  ;;  %vm196_vm4 = vweird.f32 %v704_v0 }
  0x23   :  { %v128_v52 = vmul.u32 %v126_v46, %v102_v40  ;;  %v129_v53 = vmul.u32 %v127_v47, %v102_v40  ;;  %v130_v54 = vmul.u32 %v126_v46, %v103_v41  ;;  %v131_v58 = vmul.u32 %v127_v47, %v103_v41 }
  0x24   :  { %v106_v49 = vmul.u32 %v104_v44, %v102_v40  ;;  %v107_v50 = vmul.u32 %v105_v45, %v102_v40  ;;  %v108_v51 = vmul.u32 %v104_v44, %v103_v41  ;;  %v109_v55 = vmul.u32 %v105_v45, %v103_v41 }
  0x25   :  { %v132_v59 = vshll.u32 %v129_v53, 16  ;;  %v134_v60 = vshll.u32 %v130_v54, 16  ;;  %v133_v9 = vshrl.u32 %v129_v53, 16  ;;  %v135_v16 = vshrl.u32 %v130_v54, 16 }
  0x26   :  { %v110_v56 = vshll.u32 %v107_v50, 16  ;;  %v112_v57 = vshll.u32 %v108_v51, 16  ;;  %v111_v5 = vshrl.u32 %v107_v50, 16  ;;  %v113_v13 = vshrl.u32 %v108_v51, 16 }
  0x27   :  { %vm136_vm6 = vc.u32 %v128_v52, %v132_v59  ;;  %v138_v4 = vadd.s32 %v132_v59, %v128_v52 }
  0x28   :  { %vm114_vm5 = vc.u32 %v106_v49, %v110_v56  ;;  %v116_v62 = vadd.s32 %v110_v56, %v106_v49  ;;  %v137_v7 = vsel %vm136_vm6, 1, %v671_v1  ;;  %vm370_vm6 = vcmask 388416  }
  0x29   :  { %v115_v2 = vsel %vm114_vm5, 1, %v671_v1  ;;  %v139_v11 = vadd.s32 %v137_v7, %v131_v58  ;;  %vm140_vm8 = vc.u32 %v138_v4, %v134_v60  ;;  %v142_v19 = vadd.s32 %v138_v4, %v134_v60 }
  0x2a   :  { %v117_v6 = vadd.s32 %v115_v2, %v109_v55  ;;  %vm118_vm7 = vc.u32 %v116_v62, %v112_v57  ;;  %v141_v15 = vsel %vm140_vm8, 1, %v671_v1  ;;  %vm363_vm5 = vcmask 60416  }
  0x2b   :  { %v119_v8 = vsel %vm118_vm7, 1, %v671_v1  ;;  %v143_v17 = vadd.s32 %v141_v15, %v139_v11  ;;  %vm382_vm7 = vcmask 126016   ;;  %vm389_vm8 = vcmask 454016  }
  0x2c   :  { %v121_v14 = vadd.s32 %v119_v8, %v117_v6 }
  0x2d   :  { %v144_v21 = vadd.s32 %v143_v17, %v133_v9 }
  0x2e   :  { %v122_v18 = vadd.s32 %v121_v14, %v111_v5 }
  0x2f   :  { %v145_v23 = vadd.s32 %v144_v21, %v135_v16 }
  0x30   :  { %v123_v22 = vadd.s32 %v122_v18, %v113_v13 }
  0x31   :  { %v149_v25 = vadd.s32 1, %v145_v23 }
  0x32   :  { %vm148_vm9 = vc.u32 %v123_v22, %v142_v19  ;;  %v147_v10 = vadd.s32 %v142_v19, %v123_v22 }
  0x33   :  { %v150_v26 = vsel %vm148_vm9, %v149_v25, %v145_v23  ;;  %vm402_vm9 = vcmask 191616  }
  0x34   :  { %v151_v27 = vadd.s32 %v150_v26, %v146_v24 }
  0x36   :  { %v152_v29 = vadd.s32 536870912, %v151_v27 }
  0x38   :  { %v153_v30 = vshrl.u32 %v152_v29, 30 }
  0x3a   :  { %v154_v31 = vshll.u32 %v153_v30, 30  ;;  %v177_v48 = vsub.s32 4, %v153_v30 }
  0x3c   :  { %v155_v32 = vsub.s32 %v151_v27, %v154_v31  ;;  %v178_v51 = vsel %vm55_vm12, %v177_v48, %v153_v30 }
  0x3d   :  { %v180_v54 = vsel %vm54_vm13, 0, %v178_v51  ;;  %v560_v51 = vld [vmem:[#allocation6 + $0x18] sm:$0xff] }
  0x3e   :  { %vm156_vm10 = vcmp.lt.s32.totalorder %v155_v32, 0  ;;  %v157_v33 = vsub.s32 0, %v155_v32  ;;  %v351_v59 = vadd.s32 3, %v180_v54  ;;  %v197_v1 = vand.u32 3, %v180_v54  ;;  %v557_v54 = vld [vmem:[#allocation6] sm:$0xff] }
  0x40   :  { %v158_v34 = vsel %vm156_vm10, %v157_v33, %v155_v32  ;;  %v352_v2 = vand.u32 3, %v351_v59  ;;  %vm202_vm14 = vcmp.eq.s32.totalorder %v197_v1, 2  ;;  %vm198_vm0 = vcmp.lt.s32.totalorder %v197_v1, 2 }
  0x41   :  { %v159_v35 = vclz %v158_v34  ;;  %vm199_vm1 = vcmp.eq.s32.totalorder %v197_v1, 0  ;;  %vm409_vm10 = vcmask 519616  }
  0x42   :  { %vm357_vm15 = vcmp.eq.s32.totalorder %v352_v2, 2  ;;  %vm354_vm2 = vcmp.eq.s32.totalorder %v352_v2, 0  ;;  %vm353_vm3 = vcmp.lt.s32.totalorder %v352_v2, 2 }
  0x43   :  { %v531_v36 = vadd.s32 4294967294, %v159_v35 }
  0x45   :  { %vm532_vm11 = vcmp.lt.s32.totalorder %v531_v36, 0 }
  0x46   :  { %v162_v37 = vsel %vm532_vm11, 0, %v531_v36  ;;  %vm422_vm11 = vcmask 257216  }
  0x47   :  { %v163_v38 = vsub.s32 32, %v162_v37  ;;  %v164_v39 = vshll.u32 %v155_v32, %v162_v37  ;;  %v167_v40 = vsub.s32 4294967266, %v162_v37 }
  0x49   :  { %v165_v28 = vshrl.u32 %v147_v10, %v163_v38  ;;  %v168_v41 = vadd.s32 127, %v167_v40 }
  0x4b   :  { %v166_v42 = vor.u32 %v165_v28, %v164_v39  ;;  %v169_v43 = vshll.u32 %v168_v41, 23 }
  0x4d   :  { %v170_v44 = vor.u32 4788187, %v169_v43  ;;  %v173_v45 = vcvt.s32.f32 %v166_v42 }
  0x4f   :  { %v171_v46 = vand.u32 2147483647, %v170_v44 }
  0x51   :  { %v174_v47 = vmul.f32 %v173_v45, %v171_v46 }
  0x53   :  { %v175_v49 = vxor.u32 2147483648, %v174_v47 }
  0x55   :  { %v176_v50 = vsel %vm55_vm12, %v175_v49, %v174_v47  ;;  %vm429_vm12 = vcmask 585216  }
  0x56   :  { %v179_v52 = vsel %vm54_vm13, %v704_v0, %v176_v50  ;;  %v561_v50 = vld [vmem:[#allocation6 + $0x20] sm:$0xff]  ;;  %vm442_vm13 = vcmask 322816  }
  0x57   :  { %v181_v53 = vmul.f32 %v179_v52, %v179_v52  ;;  %500 = vmatpush.bf16.msra.mxu0 %v561_v50 }
  0x59   :  { %v182_v55 = vmul.f32 -0.001358992, %v181_v53  ;;  %v189_v56 = vmul.f32 -0.00019511016, %v181_v53 }
  0x5b   :  { %v183_v57 = vadd.f32 0.041655596, %v182_v55  ;;  %v190_v58 = vadd.f32 0.008332121, %v189_v56  ;;  %501 = vmatpush.bf16.msra.mxu0 %v560_v51 }
  0x5d   :  { %v184_v60 = vmul.f32 %v183_v57, %v181_v53  ;;  %v191_v61 = vmul.f32 %v190_v58, %v181_v53 }
  0x5f   :  { %v185_v62 = vadd.f32 -0.4999988, %v184_v60  ;;  %v192_v63 = vadd.f32 -0.16666654, %v191_v61 }
  0x61   :  { %v186_v4 = vmul.f32 %v185_v62, %v181_v53  ;;  %v193_v3 = vmul.f32 %v192_v63, %v181_v53  ;;  %v558_v53 = vld [vmem:[#allocation6 + $0x8] sm:$0xff] }
  0x63   :  { %v187_v5 = vadd.f32 1.0, %v186_v4  ;;  %v194_v6 = vadd.f32 1.0, %v193_v3 }
  0x65   :  { %v195_v7 = vmul.f32 %v194_v6, %v179_v52  ;;  %v203_v8 = vxor.u32 2147483648, %v187_v5  ;;  %v559_v52 = vld [vmem:[#allocation6 + $0x10] sm:$0xff] }
  0x66   :  { %502 = vmatpush.bf16.msra.mxu0 %v559_v52 }
  0x67   :  { %v200_v9 = vxor.u32 2147483648, %v195_v7  ;;  %v359_v11 = vsel %vm357_vm15, %v203_v8, %v195_v7  ;;  %v204_v12 = vsel %vm202_vm14, %v203_v8, %v195_v7  ;;  %vm449_vm14 = vcmask 650816  }
  0x68   :  { %vm493_vm15 = vcmask 654336  }
  0x69   :  { %v356_v13 = vsel %vm354_vm2, %v187_v5, %v200_v9  ;;  %v201_v14 = vsel %vm199_vm1, %v187_v5, %v200_v9 }
  0x6a   :  { %v360_v15 = vsel %vm353_vm3, %v356_v13, %v359_v11  ;;  %v205_v16 = vsel %vm198_vm0, %v201_v14, %v204_v12  ;;  %503 = vmatpush.bf16.msra.mxu0 %v558_v53 }
  0x6b   :  { %v361_v17 = vsel %vm196_vm4, nan, %v360_v15  ;;  %v206_v18 = vsel %vm196_vm4, nan, %v205_v16 }
  0x6c   :  { %v365_v19 = vpack.c.bf16 %v361_v17, %v361_v17  ;;  %v375_v20 = vmul.f32 %v361_v17, %v206_v18  ;;  %v372_v21 = vmul.f32 %v206_v18, %v206_v18  ;;  %v373_v22 = vmul.f32 %v361_v17, %v361_v17 }
  0x6d   :  { %v362_v49 = vpack.c.bf16 %v206_v18, %v206_v18 }
  0x6e   :  { %367 = vrot.lane.b32.xlu0 %v365_v19, %s672_s0  ;;  %v376_v23 = vadd.f32 %v375_v20, %v375_v20  ;;  %v374_v24 = vsub.f32 %v372_v21, %v373_v22  ;;  %504 = vmatpush.bf16.msra.mxu0 %v557_v54 }
  0x6f   :  { %364 = vst.msk [vmem:[#allocation2] sm:$0xf] %vm363_vm5, %v362_v49 }
  0x70   :  { %v384_v25 = vpack.c.bf16 %v376_v23, %v376_v23  ;;  %v394_v26 = vmul.f32 %v376_v23, %v206_v18  ;;  %v395_v27 = vmul.f32 %v374_v24, %v361_v17  ;;  %v391_v29 = vmul.f32 %v374_v24, %v206_v18 }
  0x71   :  { %v392_v30 = vmul.f32 %v376_v23, %v361_v17  ;;  %v377_v0 = vpack.c.bf16 %v374_v24, %v374_v24 }
  0x72   :  { %386 = vrot.lane.b32.xlu1 %v384_v25, %s673_s1  ;;  %v396_v31 = vadd.f32 %v395_v27, %v394_v26 }
  0x73   :  { %v393_v32 = vsub.f32 %v391_v29, %v392_v30 }
  0x74   :  { %v414_v33 = vmul.f32 %v396_v31, %v206_v18  ;;  %v412_v34 = vmul.f32 %v396_v31, %v361_v17  ;;  %v404_v35 = vpack.c.bf16 %v396_v31, %v396_v31 }
  0x75   :  { %v415_v36 = vmul.f32 %v393_v32, %v361_v17  ;;  %v411_v10 = vmul.f32 %v393_v32, %v206_v18  ;;  %v397_v37 = vpack.c.bf16 %v393_v32, %v393_v32 }
  0x76   :  { %379 = vrot.lane.b32.xlu0 %v377_v0, %s674_s21  ;;  %406 = vrot.lane.b32.xlu2 %v404_v35, %s675_s22 }
  0x77   :  { %v416_v38 = vadd.f32 %v415_v36, %v414_v33  ;;  %v413_v39 = vsub.f32 %v411_v10, %v412_v34 }
  0x79   :  { %v431_v40 = vmul.f32 %v413_v39, %v206_v18  ;;  %v432_v28 = vmul.f32 %v416_v38, %v361_v17  ;;  %v424_v41 = vpack.c.bf16 %v416_v38, %v416_v38  ;;  %v417_v42 = vpack.c.bf16 %v413_v39, %v413_v39 }
  0x7a   :  { %399 = vrot.lane.b32.xlu1 %v397_v37, %s676_s23  ;;  %v434_v43 = vmul.f32 %v416_v38, %v206_v18  ;;  %v435_v44 = vmul.f32 %v413_v39, %v361_v17 }
  0x7b   :  { %v433_v45 = vsub.f32 %v431_v40, %v432_v28 }
  0x7c   :  { %v436_v47 = vadd.f32 %v435_v44, %v434_v43 }
  0x7d   :  { %v437_v46 = vpack.c.bf16 %v433_v45, %v433_v45 }
  0x7e   :  { %426 = vrot.lane.b32.xlu0 %v424_v41, %s663_s19  ;;  %419 = vrot.lane.b32.xlu2 %v417_v42, %s677_s24  ;;  %v444_v48 = vpack.c.bf16 %v436_v47, %v436_v47 }
  0x82   :  { %439 = vrot.lane.b32.xlu1 %v437_v46, %s678_s25 }
  0x86   :  { %446 = vrot.lane.b32.xlu2 %v444_v48, %s679_s26 }
  0xd0   :  { %v407_v55 = vpop.permute.xlu2 %406 }
  0xd8   :  { %v420_v59 = vpop.permute.xlu2 %419 }
  0xe0   :  { %v368_v56 = vpop.permute.xlu0 %367  ;;  %v447_v62 = vpop.permute.xlu2 %446 }
  0xe1   :  { %371 = vst.msk [vmem:[#allocation2] sm:$0xf] %vm370_vm6, %v368_v56 }
  0xe4   :  { %v387_v57 = vpop.permute.xlu1 %386 }
  0xe8   :  { %v380_v58 = vpop.permute.xlu0 %379 }
  0xe9   :  { %383 = vst.msk [vmem:[#allocation2] sm:$0xf] %vm382_vm7, %v380_v58 }
  0xea   :  { %390 = vst.msk [vmem:[#allocation2] sm:$0xf] %vm389_vm8, %v387_v57 }
  0xec   :  { %v400_v60 = vpop.permute.xlu1 %399 }
  0xed   :  { %403 = vst.msk [vmem:[#allocation2] sm:$0xf] %vm402_vm9, %v400_v60 }
  0xee   :  { %410 = vst.msk [vmem:[#allocation2] sm:$0xf] %vm409_vm10, %v407_v55 }
  0xef   :  { %423 = vst.msk [vmem:[#allocation2] sm:$0xf] %vm422_vm11, %v420_v59 }
  0xf0   :  { %v427_v61 = vpop.permute.xlu0 %426 }
  0xf1   :  { %430 = vst.msk [vmem:[#allocation2] sm:$0xf] %vm429_vm12, %v427_v61 }
  0xf4   :  { %v440_v63 = vpop.permute.xlu1 %439 }
  0xf5   :  { %443 = vst.msk [vmem:[#allocation2] sm:$0xf] %vm442_vm13, %v440_v63 }
  0xf6   :  { %450 = vst.msk [vmem:[#allocation2] sm:$0xf] %vm449_vm14, %v447_v62 }
  0xfd   :  { %v452_v1 = vld [vmem:[#allocation2] sm:$0xf] }
  0xfe   :  { %556 = vmatmul.msk.bf16.vlgmr.msra.gmra.mxu0 %vm493_vm15, %v452_v1 }
 0x17b   :  { %v506_v2 = vpop.f32.mrf.mxu0 }
 0x17c   :  { %511 = vst [vmem:[#allocation8] sm:$0xff] %v506_v2 }
 0x17d   :  { %522 = dma.vmem_to_hbm [thread:$0]  %s518_s28, 128, %s520_s3, [#allocation5]  }
 0x183   :  { %v508_v4 = vpop.f32.mrf.mxu0 }
 0x184   :  { %659 = dma.done.wait [#allocation5], 128  }
 0x185   :  { %660 = vsyncadd [#allocation5], 4294967168 }
 0x186   :  { %527 = vsyncpa [#allocation4], 1 }
 0x187   :  { %528 = vsyncpa [#allocation7], 1 }
 0x188   :  { %529 = vsyncpa [#allocation5], 1 }

</bundles_post_ra>
